<compile_context>
chip_gen: v7x
topology: tpu7x:2x2x1
jax: 0.10.0
libtpu: 0.0.40
codegen_flags: <defaults>
</compile_context>

<pallas_src>
import jax
import jax.numpy as jnp
from jax.experimental import pallas as pl
from jax.experimental.pallas import tpu as pltpu


def _round_up(x, m):
    return (x + m - 1) // m * m


def _make_kernel(views, hidden):
    def kernel(x_ref, w1_ref, b1_ref, w2_ref, b2_ref, wh_ref, bh_ref, o_ref):
        """One row-tile step; statically unrolled loop over views.

        x_ref  : (TM, V*hidden)     f32 (native z layout; cast to bf16 here)
        w1_ref : (V, hidden, Hp)    bf16    b1_ref : (V, 1, Hp)        f32
        w2_ref : (V, Hp, Hp)        bf16    b2_ref : (V, 1, Hp)        f32
        wh_ref : (V, Hp, head_out)  bf16    bh_ref : (V, 1, head_out)  f32
        o_ref  : (V, TM, head_out)  bf16
        """
        cdt = w1_ref.dtype
        xb = x_ref[...].astype(cdt)                      # single f32->bf16 cast
        for v in range(views):                           # static unroll
            xv = xb[:, v * hidden:(v + 1) * hidden]      # static lane slice
            h1 = jnp.dot(xv, w1_ref[v],
                         preferred_element_type=jnp.float32) + b1_ref[v]
            h1 = jnp.maximum(h1, 0.0).astype(cdt)
            h2 = jnp.dot(h1, w2_ref[v],
                         preferred_element_type=jnp.float32) + b2_ref[v]
            h2 = jnp.maximum(h2, 0.0).astype(cdt)
            out = jnp.dot(h2, wh_ref[v],
                          preferred_element_type=jnp.float32) + bh_ref[v]
            o_ref[v] = out.astype(o_ref.dtype)           # bf16 store
    return kernel


def multi_view_film(z, params, *, film_first, depth, channel,
                    row_tile=512, compute_dtype=jnp.bfloat16,
                    out_dtype=jnp.bfloat16):
    """z: (B, T, V, hidden) float32.
    Returns (scales, biases), each of shape (V, d, B, T, channel),
    d = 1 if film_first else depth — matching MultiViewFiLM(film_once=True)."""
    B, T, V, hidden = z.shape
    N = B * T
    d = 1 if film_first else depth
    out_dim = channel if film_first else depth * channel
    H = params["w1"].shape[-1]                # new_hidden
    Hp = _round_up(H, 128)                    # lane-dense intermediates

    head_cols = 2 * out_dim
    head_128 = _round_up(head_cols, 128)
    # Pad the fused head to 128 lanes only when write amplification stays small.
    head_out = head_128 if head_128 * 2 <= head_cols * 3 else head_cols

    # ---- pack / pad weights (zeros through ReLU keep numerics identical) ----
    def padc(a, cols):  # zero-pad last dim
        return jnp.pad(a, ((0, 0), (0, 0), (0, cols - a.shape[-1])))

    w1 = padc(params["w1"], Hp).astype(compute_dtype)                  # (V,hidden,Hp)
    b1 = padc(params["b1"], Hp).astype(jnp.float32)                    # (V,1,Hp)
    w2 = jnp.pad(params["w2"], ((0, 0), (0, Hp - H), (0, 0)))
    w2 = padc(w2, Hp).astype(compute_dtype)                            # (V,Hp,Hp)
    b2 = padc(params["b2"], Hp).astype(jnp.float32)                    # (V,1,Hp)
    wh = jnp.concatenate([params["ws"], params["wb"]], axis=-1)        # (V,H,2*out_dim)
    wh = jnp.pad(wh, ((0, 0), (0, Hp - H), (0, 0)))
    wh = padc(wh, head_out).astype(compute_dtype)                      # (V,Hp,head_out)
    bh = jnp.concatenate([params["bs"], params["bb"]], axis=-1)
    bh = padc(bh, head_out).astype(jnp.float32)                        # (V,1,head_out)

    # ---- z stays in native layout: (B,T,V,h) -> (N, V*h) is a free view -----
    x = z.reshape(N, V * hidden)

    weight_bytes = sum(int(a.size) * a.dtype.itemsize
                       for a in (w1, b1, w2, b2, wh, bh))
    out_itemsize = jnp.dtype(out_dtype).itemsize

    def vmem_need(t):
        x_buf = 2 * t * V * hidden * 4                    # double-buffered f32 input
        o_buf = 2 * V * t * head_out * out_itemsize       # double-buffered output
        inter = 3 * t * Hp * 4 + t * V * hidden * 2       # f32 h1/h2/out + bf16 x copy
        return x_buf + o_buf + 2 * weight_bytes + inter   # worst-case weight buffering

    tm = min(_round_up(N, 16), _round_up(row_tile, 16))   # bf16 sublane packing
    budget = 44 * 2**20                                   # conservative vs v7x 64 MiB/core
    while tm > 16 and vmem_need(tm) > budget:
        tm = max(16, _round_up(tm // 2, 16))

    grid = (pl.cdiv(N, tm),)
    vmem_limit = int(min(60 * 2**20, max(vmem_need(tm) * 3 // 2, 8 * 2**20)))

    flops = 2 * V * N * (hidden * Hp + Hp * Hp + Hp * head_out)
    bytes_accessed = (int(x.size) * 4 + weight_bytes
                      + V * N * head_out * out_itemsize)

    kernel = _make_kernel(V, hidden)

    def call(single_buffer_weights):
        w_kwargs = ({"pipeline_mode": pl.Buffered(1)}
                    if single_buffer_weights else {})

        def w_spec(a):  # whole-array block, VMEM-resident across all row tiles
            return pl.BlockSpec(a.shape, lambda i: (0, 0, 0), **w_kwargs)

        return pl.pallas_call(
            kernel,
            out_shape=jax.ShapeDtypeStruct((V, N, head_out), out_dtype),
            grid=grid,
            in_specs=[
                pl.BlockSpec((tm, V * hidden), lambda i: (i, 0)),
                w_spec(w1), w_spec(b1), w_spec(w2), w_spec(b2),
                w_spec(wh), w_spec(bh),
            ],
            out_specs=pl.BlockSpec((V, tm, head_out), lambda i: (0, i, 0)),
            compiler_params=pltpu.CompilerParams(
                dimension_semantics=("parallel",),
                vmem_limit_bytes=vmem_limit),
            cost_estimate=pl.CostEstimate(flops=int(flops), transcendentals=0,
                                          bytes_accessed=int(bytes_accessed)),
        )(x, w1, b1, w2, b2, wh, bh)

    try:
        fused = call(True)       # single-buffer the grid-invariant weights
    except Exception:            # pipeline_mode / Buffered(1) unsupported -> default
        fused = call(False)

    # ---- split heads, rearrange to the module's output layout ---------------
    scales = fused[:, :, :out_dim]
    biases = fused[:, :, out_dim:head_cols]
    # '(b t) (depth channel) -> depth b t channel' per view (module semantics).
    # Consumers that can take (V, B, T, d, channel) should skip this transpose.
    scales = scales.reshape(V, B, T, d, channel).transpose(0, 3, 1, 2, 4)
    biases = biases.reshape(V, B, T, d, channel).transpose(0, 3, 1, 2, 4)
    return scales.astype(jnp.float32), biases.astype(jnp.float32)


def init_params(key, views, hidden, channel, depth, film_first):
    """Deterministic synthetic per-view parameters; shapes match the nn.Module
    (weights stored (in, out), biases as (1, out))."""
    new_hidden = depth * channel * 2
    out_dim = channel if film_first else depth * channel

    def lin(k, fan_in, fan_out):
        kw, kb = jax.random.split(k)
        w = jax.random.normal(kw, (views, fan_in, fan_out),
                              jnp.float32) / jnp.sqrt(fan_in)
        b = jax.random.normal(kb, (views, 1, fan_out), jnp.float32) * 0.01
        return w, b

    k1, k2, k3, k4 = jax.random.split(key, 4)
    w1, b1 = lin(k1, hidden, new_hidden)
    w2, b2 = lin(k2, new_hidden, new_hidden)
    ws, bs = lin(k3, new_hidden, out_dim)
    wb, bb = lin(k4, new_hidden, out_dim)
    return dict(w1=w1, b1=b1, w2=w2, b2=b2, ws=ws, bs=bs, wb=wb, bb=bb)


def _reference(z, params, *, film_first, depth, channel):
    """Plain-JAX reference mirroring the kernel's bf16-operand / f32-accumulate
    numerics (operands rounded to bf16, intermediates re-rounded)."""
    B, T, V, hidden = z.shape
    N = B * T
    d = 1 if film_first else depth

    def rb(a):  # round-to-bf16 then back to f32
        return a.astype(jnp.bfloat16).astype(jnp.float32)

    scales, biases = [], []
    for v in range(V):
        x = z[:, :, v, :].reshape(N, hidden)
        h1 = jnp.maximum(rb(x) @ rb(params["w1"][v]) + params["b1"][v], 0.0)
        h2 = jnp.maximum(rb(h1) @ rb(params["w2"][v]) + params["b2"][v], 0.0)
        s = rb(h2) @ rb(params["ws"][v]) + params["bs"][v]
        b = rb(h2) @ rb(params["wb"][v]) + params["bb"][v]
        scales.append(s.reshape(B, T, d, channel).transpose(2, 0, 1, 3))
        biases.append(b.reshape(B, T, d, channel).transpose(2, 0, 1, 3))
    return jnp.stack(scales), jnp.stack(biases)


if __name__ == "__main__":
    # Small config consistent with MultiViewFiLM(film_once=True, film_first=False).
    B, T, views = 2, 8, 2
    hidden, channel, depth = 32, 4, 3
    film_first = False

    key = jax.random.PRNGKey(0)
    kz, kp = jax.random.split(key)
    z = jax.random.normal(kz, (B, T, views, hidden), jnp.float32)
    params = init_params(kp, views, hidden, channel, depth, film_first)

    scales, biases = multi_view_film(
        z, params, film_first=film_first, depth=depth, channel=channel)
    jax.block_until_ready((scales, biases))

    s_ref, b_ref = _reference(
        z, params, film_first=film_first, depth=depth, channel=channel)

    d = 1 if film_first else depth
    assert scales.shape == (views, d, B, T, channel), scales.shape
    assert biases.shape == (views, d, B, T, channel), biases.shape
    assert jnp.allclose(scales, s_ref, atol=3e-2, rtol=3e-2)
    assert jnp.allclose(biases, b_ref, atol=3e-2, rtol=3e-2)

    print("KERNEL_OK")
</pallas_src>

<mosaic_0001>
module attributes {stable_mosaic.version = 11 : i64} {
  func.func @kernel(%arg0: i32, %arg1: memref<16x64xf32, #tpu.memory_space<vmem>>, %arg2: memref<2x32x128xbf16, #tpu.memory_space<vmem>>, %arg3: memref<2x1x128xf32, #tpu.memory_space<vmem>>, %arg4: memref<2x128x128xbf16, #tpu.memory_space<vmem>>, %arg5: memref<2x1x128xf32, #tpu.memory_space<vmem>>, %arg6: memref<2x128x24xbf16, #tpu.memory_space<vmem>>, %arg7: memref<2x1x24xf32, #tpu.memory_space<vmem>>, %arg8: memref<2x16x24xbf16, #tpu.memory_space<vmem>>) attributes {dimension_semantics = [#tpu.dimension_semantics<parallel>], iteration_bounds = array<i64: 1>, scalar_prefetch = 0 : i64, scratch_operands = 0 : i64, tpu.core_type = #tpu.core_type<tc>, window_params = [{transform_indices = @transform_0, window_bounds = array<i64: 16, 64>}, {pipeline_mode = #tpu.pipeline_mode<synchronous>, transform_indices = @transform_1, window_bounds = array<i64: 2, 32, 128>}, {pipeline_mode = #tpu.pipeline_mode<synchronous>, transform_indices = @transform_2, window_bounds = array<i64: 2, 1, 128>}, {pipeline_mode = #tpu.pipeline_mode<synchronous>, transform_indices = @transform_3, window_bounds = array<i64: 2, 128, 128>}, {pipeline_mode = #tpu.pipeline_mode<synchronous>, transform_indices = @transform_4, window_bounds = array<i64: 2, 1, 128>}, {pipeline_mode = #tpu.pipeline_mode<synchronous>, transform_indices = @transform_5, window_bounds = array<i64: 2, 128, 24>}, {pipeline_mode = #tpu.pipeline_mode<synchronous>, transform_indices = @transform_6, window_bounds = array<i64: 2, 1, 24>}, {transform_indices = @transform_7, window_bounds = array<i64: 2, 16, 24>}]} {
    %c0 = arith.constant 0 : index
    %c0_0 = arith.constant 0 : index
    %0 = vector.load %arg1[%c0, %c0_0] : memref<16x64xf32, #tpu.memory_space<vmem>>, vector<16x64xf32>
    %1 = arith.truncf %0 : vector<16x64xf32> to vector<16x64xbf16>
    %2 = vector.extract_strided_slice %1 {offsets = [0, 0], sizes = [16, 32], strides = [1, 1]} : vector<16x64xbf16> to vector<16x32xbf16>
    %c0_1 = arith.constant 0 : index
    %c0_2 = arith.constant 0 : index
    %c0_3 = arith.constant 0 : index
    %3 = vector.load %arg2[%c0_1, %c0_2, %c0_3] : memref<2x32x128xbf16, #tpu.memory_space<vmem>>, vector<1x32x128xbf16>
    %4 = vector.shape_cast %3 : vector<1x32x128xbf16> to vector<32x128xbf16>
    %cst = arith.constant dense<0.000000e+00> : vector<16x128xf32>
    %5 = tpu.matmul %2, %4, %cst {dimension_numbers = #tpu.dot_dimension_numbers<[1], [0], [0], [1], [0, 0, 1, 1], [], []>} : vector<16x32xbf16>, vector<32x128xbf16>, vector<16x128xf32> -> vector<16x128xf32>
    %c0_4 = arith.constant 0 : index
    %c0_5 = arith.constant 0 : index
    %c0_6 = arith.constant 0 : index
    %6 = vector.load %arg3[%c0_4, %c0_5, %c0_6] : memref<2x1x128xf32, #tpu.memory_space<vmem>>, vector<1x1x128xf32>
    %7 = vector.shape_cast %6 : vector<1x1x128xf32> to vector<1x128xf32>
    %8 = vector.broadcast %7 : vector<1x128xf32> to vector<16x128xf32>
    %9 = arith.addf %5, %8 : vector<16x128xf32>
    %cst_7 = arith.constant 0.000000e+00 : f32
    %10 = vector.broadcast %cst_7 : f32 to vector<16x128xf32>
    %11 = arith.maximumf %9, %10 : vector<16x128xf32>
    %12 = arith.truncf %11 : vector<16x128xf32> to vector<16x128xbf16>
    %c0_8 = arith.constant 0 : index
    %c0_9 = arith.constant 0 : index
    %c0_10 = arith.constant 0 : index
    %13 = vector.load %arg4[%c0_8, %c0_9, %c0_10] : memref<2x128x128xbf16, #tpu.memory_space<vmem>>, vector<1x128x128xbf16>
    %14 = vector.shape_cast %13 : vector<1x128x128xbf16> to vector<128x128xbf16>
    %cst_11 = arith.constant dense<0.000000e+00> : vector<16x128xf32>
    %15 = tpu.matmul %12, %14, %cst_11 {dimension_numbers = #tpu.dot_dimension_numbers<[1], [0], [0], [1], [0, 0, 1, 1], [], []>} : vector<16x128xbf16>, vector<128x128xbf16>, vector<16x128xf32> -> vector<16x128xf32>
    %c0_12 = arith.constant 0 : index
    %c0_13 = arith.constant 0 : index
    %c0_14 = arith.constant 0 : index
    %16 = vector.load %arg5[%c0_12, %c0_13, %c0_14] : memref<2x1x128xf32, #tpu.memory_space<vmem>>, vector<1x1x128xf32>
    %17 = vector.shape_cast %16 : vector<1x1x128xf32> to vector<1x128xf32>
    %18 = vector.broadcast %17 : vector<1x128xf32> to vector<16x128xf32>
    %19 = arith.addf %15, %18 : vector<16x128xf32>
    %cst_15 = arith.constant 0.000000e+00 : f32
    %20 = vector.broadcast %cst_15 : f32 to vector<16x128xf32>
    %21 = arith.maximumf %19, %20 : vector<16x128xf32>
    %22 = arith.truncf %21 : vector<16x128xf32> to vector<16x128xbf16>
    %c0_16 = arith.constant 0 : index
    %c0_17 = arith.constant 0 : index
    %c0_18 = arith.constant 0 : index
    %23 = vector.load %arg6[%c0_16, %c0_17, %c0_18] : memref<2x128x24xbf16, #tpu.memory_space<vmem>>, vector<1x128x24xbf16>
    %24 = vector.shape_cast %23 : vector<1x128x24xbf16> to vector<128x24xbf16>
    %cst_19 = arith.constant dense<0.000000e+00> : vector<16x24xf32>
    %25 = tpu.matmul %22, %24, %cst_19 {dimension_numbers = #tpu.dot_dimension_numbers<[1], [0], [0], [1], [0, 0, 1, 1], [], []>} : vector<16x128xbf16>, vector<128x24xbf16>, vector<16x24xf32> -> vector<16x24xf32>
    %c0_20 = arith.constant 0 : index
    %c0_21 = arith.constant 0 : index
    %c0_22 = arith.constant 0 : index
    %26 = vector.load %arg7[%c0_20, %c0_21, %c0_22] : memref<2x1x24xf32, #tpu.memory_space<vmem>>, vector<1x1x24xf32>
    %27 = vector.shape_cast %26 : vector<1x1x24xf32> to vector<1x24xf32>
    %28 = vector.broadcast %27 : vector<1x24xf32> to vector<16x24xf32>
    %29 = arith.addf %25, %28 : vector<16x24xf32>
    %30 = arith.truncf %29 : vector<16x24xf32> to vector<16x24xbf16>
    %c0_23 = arith.constant 0 : index
    %c0_24 = arith.constant 0 : index
    %c0_25 = arith.constant 0 : index
    %31 = vector.load %arg8[%c0_23, %c0_24, %c0_25] : memref<2x16x24xbf16, #tpu.memory_space<vmem>>, vector<1x16x24xbf16>
    %32 = vector.shape_cast %31 : vector<1x16x24xbf16> to vector<16x24xbf16>
    %33 = vector.shape_cast %30 : vector<16x24xbf16> to vector<1x16x24xbf16>
    tpu.vector_store %arg8[%c0_23, %c0_24, %c0_25], %33 {strides = array<i32>} : memref<2x16x24xbf16, #tpu.memory_space<vmem>>, vector<1x16x24xbf16>,
    %34 = vector.extract_strided_slice %1 {offsets = [0, 32], sizes = [16, 32], strides = [1, 1]} : vector<16x64xbf16> to vector<16x32xbf16>
    %c1 = arith.constant 1 : index
    %c0_26 = arith.constant 0 : index
    %c0_27 = arith.constant 0 : index
    %35 = vector.load %arg2[%c1, %c0_26, %c0_27] : memref<2x32x128xbf16, #tpu.memory_space<vmem>>, vector<1x32x128xbf16>
    %36 = vector.shape_cast %35 : vector<1x32x128xbf16> to vector<32x128xbf16>
    %cst_28 = arith.constant dense<0.000000e+00> : vector<16x128xf32>
    %37 = tpu.matmul %34, %36, %cst_28 {dimension_numbers = #tpu.dot_dimension_numbers<[1], [0], [0], [1], [0, 0, 1, 1], [], []>} : vector<16x32xbf16>, vector<32x128xbf16>, vector<16x128xf32> -> vector<16x128xf32>
    %c1_29 = arith.constant 1 : index
    %c0_30 = arith.constant 0 : index
    %c0_31 = arith.constant 0 : index
    %38 = vector.load %arg3[%c1_29, %c0_30, %c0_31] : memref<2x1x128xf32, #tpu.memory_space<vmem>>, vector<1x1x128xf32>
    %39 = vector.shape_cast %38 : vector<1x1x128xf32> to vector<1x128xf32>
    %40 = vector.broadcast %39 : vector<1x128xf32> to vector<16x128xf32>
    %41 = arith.addf %37, %40 : vector<16x128xf32>
    %cst_32 = arith.constant 0.000000e+00 : f32
    %42 = vector.broadcast %cst_32 : f32 to vector<16x128xf32>
    %43 = arith.maximumf %41, %42 : vector<16x128xf32>
    %44 = arith.truncf %43 : vector<16x128xf32> to vector<16x128xbf16>
    %c1_33 = arith.constant 1 : index
    %c0_34 = arith.constant 0 : index
    %c0_35 = arith.constant 0 : index
    %45 = vector.load %arg4[%c1_33, %c0_34, %c0_35] : memref<2x128x128xbf16, #tpu.memory_space<vmem>>, vector<1x128x128xbf16>
    %46 = vector.shape_cast %45 : vector<1x128x128xbf16> to vector<128x128xbf16>
    %cst_36 = arith.constant dense<0.000000e+00> : vector<16x128xf32>
    %47 = tpu.matmul %44, %46, %cst_36 {dimension_numbers = #tpu.dot_dimension_numbers<[1], [0], [0], [1], [0, 0, 1, 1], [], []>} : vector<16x128xbf16>, vector<128x128xbf16>, vector<16x128xf32> -> vector<16x128xf32>
    %c1_37 = arith.constant 1 : index
    %c0_38 = arith.constant 0 : index
    %c0_39 = arith.constant 0 : index
    %48 = vector.load %arg5[%c1_37, %c0_38, %c0_39] : memref<2x1x128xf32, #tpu.memory_space<vmem>>, vector<1x1x128xf32>
    %49 = vector.shape_cast %48 : vector<1x1x128xf32> to vector<1x128xf32>
    %50 = vector.broadcast %49 : vector<1x128xf32> to vector<16x128xf32>
    %51 = arith.addf %47, %50 : vector<16x128xf32>
    %cst_40 = arith.constant 0.000000e+00 : f32
    %52 = vector.broadcast %cst_40 : f32 to vector<16x128xf32>
    %53 = arith.maximumf %51, %52 : vector<16x128xf32>
    %54 = arith.truncf %53 : vector<16x128xf32> to vector<16x128xbf16>
    %c1_41 = arith.constant 1 : index
    %c0_42 = arith.constant 0 : index
    %c0_43 = arith.constant 0 : index
    %55 = vector.load %arg6[%c1_41, %c0_42, %c0_43] : memref<2x128x24xbf16, #tpu.memory_space<vmem>>, vector<1x128x24xbf16>
    %56 = vector.shape_cast %55 : vector<1x128x24xbf16> to vector<128x24xbf16>
    %cst_44 = arith.constant dense<0.000000e+00> : vector<16x24xf32>
    %57 = tpu.matmul %54, %56, %cst_44 {dimension_numbers = #tpu.dot_dimension_numbers<[1], [0], [0], [1], [0, 0, 1, 1], [], []>} : vector<16x128xbf16>, vector<128x24xbf16>, vector<16x24xf32> -> vector<16x24xf32>
    %c1_45 = arith.constant 1 : index
    %c0_46 = arith.constant 0 : index
    %c0_47 = arith.constant 0 : index
    %58 = vector.load %arg7[%c1_45, %c0_46, %c0_47] : memref<2x1x24xf32, #tpu.memory_space<vmem>>, vector<1x1x24xf32>
    %59 = vector.shape_cast %58 : vector<1x1x24xf32> to vector<1x24xf32>
    %60 = vector.broadcast %59 : vector<1x24xf32> to vector<16x24xf32>
    %61 = arith.addf %57, %60 : vector<16x24xf32>
    %62 = arith.truncf %61 : vector<16x24xf32> to vector<16x24xbf16>
    %c1_48 = arith.constant 1 : index
    %c0_49 = arith.constant 0 : index
    %c0_50 = arith.constant 0 : index
    %63 = vector.load %arg8[%c1_48, %c0_49, %c0_50] : memref<2x16x24xbf16, #tpu.memory_space<vmem>>, vector<1x16x24xbf16>
    %64 = vector.shape_cast %63 : vector<1x16x24xbf16> to vector<16x24xbf16>
    %65 = vector.shape_cast %62 : vector<16x24xbf16> to vector<1x16x24xbf16>
    tpu.vector_store %arg8[%c1_48, %c0_49, %c0_50], %65 {strides = array<i32>} : memref<2x16x24xbf16, #tpu.memory_space<vmem>>, vector<1x16x24xbf16>,
    return
  }
  func.func @transform_0(%arg0: i32) -> (i32, i32) {
    %c0_i32 = arith.constant 0 : i32
    %c0_i32_0 = arith.constant 0 : i32
    return %arg0, %c0_i32 : i32, i32
  }
  func.func @transform_1(%arg0: i32) -> (i32, i32, i32) {
    %c0_i32 = arith.constant 0 : i32
    %c0_i32_0 = arith.constant 0 : i32
    %c0_i32_1 = arith.constant 0 : i32
    %c0_i32_2 = arith.constant 0 : i32
    return %c0_i32, %c0_i32_0, %c0_i32_1 : i32, i32, i32
  }
  func.func @transform_2(%arg0: i32) -> (i32, i32, i32) {
    %c0_i32 = arith.constant 0 : i32
    %c0_i32_0 = arith.constant 0 : i32
    %c0_i32_1 = arith.constant 0 : i32
    %c0_i32_2 = arith.constant 0 : i32
    return %c0_i32, %c0_i32_0, %c0_i32_1 : i32, i32, i32
  }
  func.func @transform_3(%arg0: i32) -> (i32, i32, i32) {
    %c0_i32 = arith.constant 0 : i32
    %c0_i32_0 = arith.constant 0 : i32
    %c0_i32_1 = arith.constant 0 : i32
    %c0_i32_2 = arith.constant 0 : i32
    return %c0_i32, %c0_i32_0, %c0_i32_1 : i32, i32, i32
  }
  func.func @transform_4(%arg0: i32) -> (i32, i32, i32) {
    %c0_i32 = arith.constant 0 : i32
    %c0_i32_0 = arith.constant 0 : i32
    %c0_i32_1 = arith.constant 0 : i32
    %c0_i32_2 = arith.constant 0 : i32
    return %c0_i32, %c0_i32_0, %c0_i32_1 : i32, i32, i32
  }
  func.func @transform_5(%arg0: i32) -> (i32, i32, i32) {
    %c0_i32 = arith.constant 0 : i32
    %c0_i32_0 = arith.constant 0 : i32
    %c0_i32_1 = arith.constant 0 : i32
    %c0_i32_2 = arith.constant 0 : i32
    return %c0_i32, %c0_i32_0, %c0_i32_1 : i32, i32, i32
  }
  func.func @transform_6(%arg0: i32) -> (i32, i32, i32) {
    %c0_i32 = arith.constant 0 : i32
    %c0_i32_0 = arith.constant 0 : i32
    %c0_i32_1 = arith.constant 0 : i32
    %c0_i32_2 = arith.constant 0 : i32
    return %c0_i32, %c0_i32_0, %c0_i32_1 : i32, i32, i32
  }
  func.func @transform_7(%arg0: i32) -> (i32, i32, i32) {
    %c0_i32 = arith.constant 0 : i32
    %c0_i32_0 = arith.constant 0 : i32
    %c0_i32_1 = arith.constant 0 : i32
    return %c0_i32, %arg0, %c0_i32_0 : i32, i32, i32
  }
}

module attributes {stable_mosaic.version = 11 : i64} {
  func.func @kernel(%arg0: i32, %arg1: memref<16x64xf32, #tpu.memory_space<vmem>>, %arg2: memref<2x32x128xbf16, #tpu.memory_space<vmem>>, %arg3: memref<2x1x128xf32, #tpu.memory_space<vmem>>, %arg4: memref<2x128x128xbf16, #tpu.memory_space<vmem>>, %arg5: memref<2x1x128xf32, #tpu.memory_space<vmem>>, %arg6: memref<2x128x24xbf16, #tpu.memory_space<vmem>>, %arg7: memref<2x1x24xf32, #tpu.memory_space<vmem>>, %arg8: memref<2x16x24xbf16, #tpu.memory_space<vmem>>) attributes {dimension_semantics = [#tpu.dimension_semantics<parallel>], iteration_bounds = array<i64: 1>, scalar_prefetch = 0 : i64, scratch_operands = 0 : i64, tpu.core_type = #tpu.core_type<tc>, window_params = [{transform_indices = @transform_0, window_bounds = array<i64: 16, 64>}, {pipeline_mode = #tpu.pipeline_mode<synchronous>, transform_indices = @transform_1, window_bounds = array<i64: 2, 32, 128>}, {pipeline_mode = #tpu.pipeline_mode<synchronous>, transform_indices = @transform_2, window_bounds = array<i64: 2, 1, 128>}, {pipeline_mode = #tpu.pipeline_mode<synchronous>, transform_indices = @transform_3, window_bounds = array<i64: 2, 128, 128>}, {pipeline_mode = #tpu.pipeline_mode<synchronous>, transform_indices = @transform_4, window_bounds = array<i64: 2, 1, 128>}, {pipeline_mode = #tpu.pipeline_mode<synchronous>, transform_indices = @transform_5, window_bounds = array<i64: 2, 128, 24>}, {pipeline_mode = #tpu.pipeline_mode<synchronous>, transform_indices = @transform_6, window_bounds = array<i64: 2, 1, 24>}, {transform_indices = @transform_7, window_bounds = array<i64: 2, 16, 24>}]} {
    %c0 = arith.constant 0 : index
    %c0_0 = arith.constant 0 : index
    %0 = vector.load %arg1[%c0, %c0_0] : memref<16x64xf32, #tpu.memory_space<vmem>>, vector<16x64xf32>
    %1 = arith.truncf %0 : vector<16x64xf32> to vector<16x64xbf16>
    %2 = vector.extract_strided_slice %1 {offsets = [0, 0], sizes = [16, 32], strides = [1, 1]} : vector<16x64xbf16> to vector<16x32xbf16>
    %c0_1 = arith.constant 0 : index
    %c0_2 = arith.constant 0 : index
    %c0_3 = arith.constant 0 : index
    %3 = vector.load %arg2[%c0_1, %c0_2, %c0_3] : memref<2x32x128xbf16, #tpu.memory_space<vmem>>, vector<1x32x128xbf16>
    %4 = vector.shape_cast %3 : vector<1x32x128xbf16> to vector<32x128xbf16>
    %cst = arith.constant dense<0.000000e+00> : vector<16x128xf32>
    %5 = tpu.matmul %2, %4, %cst {dimension_numbers = #tpu.dot_dimension_numbers<[1], [0], [0], [1], [0, 0, 1, 1], [], []>} : vector<16x32xbf16>, vector<32x128xbf16>, vector<16x128xf32> -> vector<16x128xf32>
    %c0_4 = arith.constant 0 : index
    %c0_5 = arith.constant 0 : index
    %c0_6 = arith.constant 0 : index
    %6 = vector.load %arg3[%c0_4, %c0_5, %c0_6] : memref<2x1x128xf32, #tpu.memory_space<vmem>>, vector<1x1x128xf32>
    %7 = vector.shape_cast %6 : vector<1x1x128xf32> to vector<1x128xf32>
    %8 = vector.broadcast %7 : vector<1x128xf32> to vector<16x128xf32>
    %9 = arith.addf %5, %8 : vector<16x128xf32>
    %cst_7 = arith.constant 0.000000e+00 : f32
    %10 = vector.broadcast %cst_7 : f32 to vector<16x128xf32>
    %11 = arith.maximumf %9, %10 : vector<16x128xf32>
    %12 = arith.truncf %11 : vector<16x128xf32> to vector<16x128xbf16>
    %c0_8 = arith.constant 0 : index
    %c0_9 = arith.constant 0 : index
    %c0_10 = arith.constant 0 : index
    %13 = vector.load %arg4[%c0_8, %c0_9, %c0_10] : memref<2x128x128xbf16, #tpu.memory_space<vmem>>, vector<1x128x128xbf16>
    %14 = vector.shape_cast %13 : vector<1x128x128xbf16> to vector<128x128xbf16>
    %cst_11 = arith.constant dense<0.000000e+00> : vector<16x128xf32>
    %15 = tpu.matmul %12, %14, %cst_11 {dimension_numbers = #tpu.dot_dimension_numbers<[1], [0], [0], [1], [0, 0, 1, 1], [], []>} : vector<16x128xbf16>, vector<128x128xbf16>, vector<16x128xf32> -> vector<16x128xf32>
    %c0_12 = arith.constant 0 : index
    %c0_13 = arith.constant 0 : index
    %c0_14 = arith.constant 0 : index
    %16 = vector.load %arg5[%c0_12, %c0_13, %c0_14] : memref<2x1x128xf32, #tpu.memory_space<vmem>>, vector<1x1x128xf32>
    %17 = vector.shape_cast %16 : vector<1x1x128xf32> to vector<1x128xf32>
    %18 = vector.broadcast %17 : vector<1x128xf32> to vector<16x128xf32>
    %19 = arith.addf %15, %18 : vector<16x128xf32>
    %cst_15 = arith.constant 0.000000e+00 : f32
    %20 = vector.broadcast %cst_15 : f32 to vector<16x128xf32>
    %21 = arith.maximumf %19, %20 : vector<16x128xf32>
    %22 = arith.truncf %21 : vector<16x128xf32> to vector<16x128xbf16>
    %c0_16 = arith.constant 0 : index
    %c0_17 = arith.constant 0 : index
    %c0_18 = arith.constant 0 : index
    %23 = vector.load %arg6[%c0_16, %c0_17, %c0_18] : memref<2x128x24xbf16, #tpu.memory_space<vmem>>, vector<1x128x24xbf16>
    %24 = vector.shape_cast %23 : vector<1x128x24xbf16> to vector<128x24xbf16>
    %cst_19 = arith.constant dense<0.000000e+00> : vector<16x24xf32>
    %25 = tpu.matmul %22, %24, %cst_19 {dimension_numbers = #tpu.dot_dimension_numbers<[1], [0], [0], [1], [0, 0, 1, 1], [], []>} : vector<16x128xbf16>, vector<128x24xbf16>, vector<16x24xf32> -> vector<16x24xf32>
    %c0_20 = arith.constant 0 : index
    %c0_21 = arith.constant 0 : index
    %c0_22 = arith.constant 0 : index
    %26 = vector.load %arg7[%c0_20, %c0_21, %c0_22] : memref<2x1x24xf32, #tpu.memory_space<vmem>>, vector<1x1x24xf32>
    %27 = vector.shape_cast %26 : vector<1x1x24xf32> to vector<1x24xf32>
    %28 = vector.broadcast %27 : vector<1x24xf32> to vector<16x24xf32>
    %29 = arith.addf %25, %28 : vector<16x24xf32>
    %30 = arith.truncf %29 : vector<16x24xf32> to vector<16x24xbf16>
    %c0_23 = arith.constant 0 : index
    %c0_24 = arith.constant 0 : index
    %c0_25 = arith.constant 0 : index
    %31 = vector.load %arg8[%c0_23, %c0_24, %c0_25] : memref<2x16x24xbf16, #tpu.memory_space<vmem>>, vector<1x16x24xbf16>
    %32 = vector.shape_cast %31 : vector<1x16x24xbf16> to vector<16x24xbf16>
    %33 = vector.shape_cast %30 : vector<16x24xbf16> to vector<1x16x24xbf16>
    tpu.vector_store %arg8[%c0_23, %c0_24, %c0_25], %33 {strides = array<i32>} : memref<2x16x24xbf16, #tpu.memory_space<vmem>>, vector<1x16x24xbf16>,
    %34 = vector.extract_strided_slice %1 {offsets = [0, 32], sizes = [16, 32], strides = [1, 1]} : vector<16x64xbf16> to vector<16x32xbf16>
    %c1 = arith.constant 1 : index
    %c0_26 = arith.constant 0 : index
    %c0_27 = arith.constant 0 : index
    %35 = vector.load %arg2[%c1, %c0_26, %c0_27] : memref<2x32x128xbf16, #tpu.memory_space<vmem>>, vector<1x32x128xbf16>
    %36 = vector.shape_cast %35 : vector<1x32x128xbf16> to vector<32x128xbf16>
    %cst_28 = arith.constant dense<0.000000e+00> : vector<16x128xf32>
    %37 = tpu.matmul %34, %36, %cst_28 {dimension_numbers = #tpu.dot_dimension_numbers<[1], [0], [0], [1], [0, 0, 1, 1], [], []>} : vector<16x32xbf16>, vector<32x128xbf16>, vector<16x128xf32> -> vector<16x128xf32>
    %c1_29 = arith.constant 1 : index
    %c0_30 = arith.constant 0 : index
    %c0_31 = arith.constant 0 : index
    %38 = vector.load %arg3[%c1_29, %c0_30, %c0_31] : memref<2x1x128xf32, #tpu.memory_space<vmem>>, vector<1x1x128xf32>
    %39 = vector.shape_cast %38 : vector<1x1x128xf32> to vector<1x128xf32>
    %40 = vector.broadcast %39 : vector<1x128xf32> to vector<16x128xf32>
    %41 = arith.addf %37, %40 : vector<16x128xf32>
    %cst_32 = arith.constant 0.000000e+00 : f32
    %42 = vector.broadcast %cst_32 : f32 to vector<16x128xf32>
    %43 = arith.maximumf %41, %42 : vector<16x128xf32>
    %44 = arith.truncf %43 : vector<16x128xf32> to vector<16x128xbf16>
    %c1_33 = arith.constant 1 : index
    %c0_34 = arith.constant 0 : index
    %c0_35 = arith.constant 0 : index
    %45 = vector.load %arg4[%c1_33, %c0_34, %c0_35] : memref<2x128x128xbf16, #tpu.memory_space<vmem>>, vector<1x128x128xbf16>
    %46 = vector.shape_cast %45 : vector<1x128x128xbf16> to vector<128x128xbf16>
    %cst_36 = arith.constant dense<0.000000e+00> : vector<16x128xf32>
    %47 = tpu.matmul %44, %46, %cst_36 {dimension_numbers = #tpu.dot_dimension_numbers<[1], [0], [0], [1], [0, 0, 1, 1], [], []>} : vector<16x128xbf16>, vector<128x128xbf16>, vector<16x128xf32> -> vector<16x128xf32>
    %c1_37 = arith.constant 1 : index
    %c0_38 = arith.constant 0 : index
    %c0_39 = arith.constant 0 : index
    %48 = vector.load %arg5[%c1_37, %c0_38, %c0_39] : memref<2x1x128xf32, #tpu.memory_space<vmem>>, vector<1x1x128xf32>
    %49 = vector.shape_cast %48 : vector<1x1x128xf32> to vector<1x128xf32>
    %50 = vector.broadcast %49 : vector<1x128xf32> to vector<16x128xf32>
    %51 = arith.addf %47, %50 : vector<16x128xf32>
    %cst_40 = arith.constant 0.000000e+00 : f32
    %52 = vector.broadcast %cst_40 : f32 to vector<16x128xf32>
    %53 = arith.maximumf %51, %52 : vector<16x128xf32>
    %54 = arith.truncf %53 : vector<16x128xf32> to vector<16x128xbf16>
    %c1_41 = arith.constant 1 : index
    %c0_42 = arith.constant 0 : index
    %c0_43 = arith.constant 0 : index
    %55 = vector.load %arg6[%c1_41, %c0_42, %c0_43] : memref<2x128x24xbf16, #tpu.memory_space<vmem>>, vector<1x128x24xbf16>
    %56 = vector.shape_cast %55 : vector<1x128x24xbf16> to vector<128x24xbf16>
    %cst_44 = arith.constant dense<0.000000e+00> : vector<16x24xf32>
    %57 = tpu.matmul %54, %56, %cst_44 {dimension_numbers = #tpu.dot_dimension_numbers<[1], [0], [0], [1], [0, 0, 1, 1], [], []>} : vector<16x128xbf16>, vector<128x24xbf16>, vector<16x24xf32> -> vector<16x24xf32>
    %c1_45 = arith.constant 1 : index
    %c0_46 = arith.constant 0 : index
    %c0_47 = arith.constant 0 : index
    %58 = vector.load %arg7[%c1_45, %c0_46, %c0_47] : memref<2x1x24xf32, #tpu.memory_space<vmem>>, vector<1x1x24xf32>
    %59 = vector.shape_cast %58 : vector<1x1x24xf32> to vector<1x24xf32>
    %60 = vector.broadcast %59 : vector<1x24xf32> to vector<16x24xf32>
    %61 = arith.addf %57, %60 : vector<16x24xf32>
    %62 = arith.truncf %61 : vector<16x24xf32> to vector<16x24xbf16>
    %c1_48 = arith.constant 1 : index
    %c0_49 = arith.constant 0 : index
    %c0_50 = arith.constant 0 : index
    %63 = vector.load %arg8[%c1_48, %c0_49, %c0_50] : memref<2x16x24xbf16, #tpu.memory_space<vmem>>, vector<1x16x24xbf16>
    %64 = vector.shape_cast %63 : vector<1x16x24xbf16> to vector<16x24xbf16>
    %65 = vector.shape_cast %62 : vector<16x24xbf16> to vector<1x16x24xbf16>
    tpu.vector_store %arg8[%c1_48, %c0_49, %c0_50], %65 {strides = array<i32>} : memref<2x16x24xbf16, #tpu.memory_space<vmem>>, vector<1x16x24xbf16>,
    return
  }
  func.func @transform_0(%arg0: i32) -> (i32, i32) {
    %c0_i32 = arith.constant 0 : i32
    %c0_i32_0 = arith.constant 0 : i32
    return %arg0, %c0_i32 : i32, i32
  }
  func.func @transform_1(%arg0: i32) -> (i32, i32, i32) {
    %c0_i32 = arith.constant 0 : i32
    %c0_i32_0 = arith.constant 0 : i32
    %c0_i32_1 = arith.constant 0 : i32
    %c0_i32_2 = arith.constant 0 : i32
    return %c0_i32, %c0_i32_0, %c0_i32_1 : i32, i32, i32
  }
  func.func @transform_2(%arg0: i32) -> (i32, i32, i32) {
    %c0_i32 = arith.constant 0 : i32
    %c0_i32_0 = arith.constant 0 : i32
    %c0_i32_1 = arith.constant 0 : i32
    %c0_i32_2 = arith.constant 0 : i32
    return %c0_i32, %c0_i32_0, %c0_i32_1 : i32, i32, i32
  }
  func.func @transform_3(%arg0: i32) -> (i32, i32, i32) {
    %c0_i32 = arith.constant 0 : i32
    %c0_i32_0 = arith.constant 0 : i32
    %c0_i32_1 = arith.constant 0 : i32
    %c0_i32_2 = arith.constant 0 : i32
    return %c0_i32, %c0_i32_0, %c0_i32_1 : i32, i32, i32
  }
  func.func @transform_4(%arg0: i32) -> (i32, i32, i32) {
    %c0_i32 = arith.constant 0 : i32
    %c0_i32_0 = arith.constant 0 : i32
    %c0_i32_1 = arith.constant 0 : i32
    %c0_i32_2 = arith.constant 0 : i32
    return %c0_i32, %c0_i32_0, %c0_i32_1 : i32, i32, i32
  }
  func.func @transform_5(%arg0: i32) -> (i32, i32, i32) {
    %c0_i32 = arith.constant 0 : i32
    %c0_i32_0 = arith.constant 0 : i32
    %c0_i32_1 = arith.constant 0 : i32
    %c0_i32_2 = arith.constant 0 : i32
    return %c0_i32, %c0_i32_0, %c0_i32_1 : i32, i32, i32
  }
  func.func @transform_6(%arg0: i32) -> (i32, i32, i32) {
    %c0_i32 = arith.constant 0 : i32
    %c0_i32_0 = arith.constant 0 : i32
    %c0_i32_1 = arith.constant 0 : i32
    %c0_i32_2 = arith.constant 0 : i32
    return %c0_i32, %c0_i32_0, %c0_i32_1 : i32, i32, i32
  }
  func.func @transform_7(%arg0: i32) -> (i32, i32, i32) {
    %c0_i32 = arith.constant 0 : i32
    %c0_i32_0 = arith.constant 0 : i32
    %c0_i32_1 = arith.constant 0 : i32
    return %c0_i32, %arg0, %c0_i32_0 : i32, i32, i32
  }
}

</mosaic_0001>

<bundles_post_ra>
// kernel: tpu_custom_call.1
= control target key start
LH: loop header
LB: loop body
LE: loop exit
PB: predicated region body
PF: predicated region fallthrough
CT: control target
= control target key end

     0   :  { %12 = vsyncpa [#allocation3], 0  ;;  %s1263_s0 = inlined_call_operand.hbm [shape: f32[16,64], index: 0, kind: input, shape index: {}]   ;;  %s1264_s1 = inlined_call_operand.vmem [shape: bf16[2,32,128], index: 1, kind: input, shape index: {}]   ;;  %s1265_s2 = inlined_call_operand.vmem [shape: f32[2,1,128], index: 2, kind: input, shape index: {}]   ;;  %s1266_s3 = inlined_call_operand.vmem [shape: bf16[2,128,128], index: 3, kind: input, shape index: {}]   ;;  %s1267_s4 = inlined_call_operand.vmem [shape: f32[2,1,128], index: 4, kind: input, shape index: {}]   ;;  %s1268_s5 = inlined_call_operand.vmem [shape: bf16[2,128,24], index: 5, kind: input, shape index: {}]   ;;  %s1269_s6 = inlined_call_operand.vmem [shape: f32[2,1,24], index: 6, kind: input, shape index: {}]   ;;  %s1270_s7 = inlined_call_operand.hbm [shape: bf16[2,16,24], index: 7, kind: output, shape index: {}]  }
   0x1   :  { %13 = vsyncpa [#allocation4], 0  ;;  %s1010_s24 = smov [#allocation2]   ;;  %s962_s28 = scalar_lea.hbm %s1263_s0, 256 }
   0x2   :  { %s19_s25 = sshll.u32 %s1010_s24, 4  ;;  %p963_p0 = scmp.ne.s32.totalorder %s1263_s0, %s962_s28  ;;  %s20_s25 = int_to_ptr.vmem [resolvable:$true] %s19_s25 }
   0x3   :  { %p966_p1 = scmp.lt.u32.totalorder %s962_s28, %s1263_s0 }
   0x5   :  { %p968_p2 = pnand %p966_p1, %p963_p0 }
   0x7   :  { %971 = shalt.err (!%p968_p2)
}
   0x8   :  { %s972_s10 = scalar_lea.vmem %s20_s25, 256  ;;  %p977_p4 = scmp.lt.s32.totalorder %s20_s25, %s20_s25 }
   0x9   :  { %p973_p3 = scmp.ne.s32.totalorder %s20_s25, %s972_s10  ;;  %p978_p5 = scmp.lt.s32.totalorder %s972_s10, %s972_s10 }
   0xb   :  { %p979_p6 = por %p978_p5, %p977_p4 }
   0xd   :  { %p980_p7 = pnand %p979_p6, %p973_p3 }
   0xf   :  { %983 = shalt.err (!%p980_p7)
}
  0x10   :  { %s1011_s11 = smov 128   ;;  %s1012_s12 = smov 8  }
  0x11   :  { %25 = dma.hbm_to_vmem [thread:$0]  %s1263_s0, 256, %s20_s25, [#allocation3], %s1011_s11, %s1011_s11, %s1012_s12  }
  0x12   :  { %1006 = dma.done.wait [#allocation3], 256  }
  0x13   :  { %1007 = vsyncadd [#allocation3], 4294967040  ;;  %v1013_v0 = vmov 0.0   ;;  %vm1014_vm0 = vmmov 0   ;;  %v926_v1 = vld [vmem:[%s1264_s1] sm:$0xff]   ;;  %v927_v2 = vld [vmem:[%s1264_s1 + $0x8] sm:$0xff]  }
  0x14   :  { %821 = vmatprep.subr.bf16.mxu0 %v1013_v0  ;;  %825 = vmatprep.mubr.msk.bf16.mxu0 %vm1014_vm0, %v1013_v0  ;;  %v42_v3 = vld [vmem:[#allocation2] sm:$0xff]  ;;  %v43_v4 = vld [vmem:[#allocation2 + $0x8] sm:$0xff]  ;;  %s1015_s20 = smov 96   ;;  %vm68_vm1 = vcmask 261120   ;;  %v930_v8 = vld [vmem:[%s1266_s3 + $0x10] sm:$0xff]   ;;  %vm351_vm2 = vcmask 191488  }
  0x15   :  { %829 = vmatprep.subr.bf16.mxu1 %v1013_v0  ;;  %845 = vmatprep.mubr.msk.bf16.mxu1 %vm1014_vm0, %v1013_v0  ;;  %v44_v5 = vpack.c.bf16 %v43_v4, %v42_v3  ;;  %v928_v6 = vld [vmem:[%s1266_s3] sm:$0xff]   ;;  %v929_v7 = vld [vmem:[%s1266_s3 + $0x8] sm:$0xff]   ;;  %v931_v9 = vld [vmem:[%s1266_s3 + $0x18] sm:$0xff]   ;;  %s1016_s21 = smov [#allocation5]  }
  0x16   :  { %822 = vmatpush3.bf16.msra.mxu0 %v926_v1  ;;  %830 = vmatpush3.bf16.msra.mxu1 %v928_v6  ;;  %v932_v10 = vld [vmem:[%s1266_s3 + $0x20] sm:$0xff]   ;;  %v933_v11 = vld [vmem:[%s1266_s3 + $0x28] sm:$0xff]   ;;  %v934_v12 = vld [vmem:[%s1266_s3 + $0x30] sm:$0xff]   ;;  %s676_s22 = sshll.u32 %s1016_s21, 4  ;;  %s677_s22 = int_to_ptr.vmem [resolvable:$true] %s676_s22 }
  0x17   :  { %823 = vmatprep.subr.bf16.mxu0 %v1013_v0  ;;  %368 = vrot.lane.b32.xlu0 %v44_v5, %s1015_s20  ;;  %v935_v13 = vld [vmem:[%s1266_s3 + $0x38] sm:$0xff]   ;;  %v938_v14 = vld [vmem:[%s1268_s5] sm:$0xff]   ;;  %v939_v15 = vld [vmem:[%s1268_s5 + $0x8] sm:$0xff]   ;;  %p989_p9 = scmp.lt.s32.totalorder %s677_s22, %s677_s22 }
  0x18   :  { %831 = vmatprep.subr.bf16.mxu1 %v1013_v0  ;;  %v940_v16 = vld [vmem:[%s1268_s5 + $0x10] sm:$0xff]   ;;  %v941_v17 = vld [vmem:[%s1268_s5 + $0x18] sm:$0xff]   ;;  %v942_v18 = vld [vmem:[%s1268_s5 + $0x20] sm:$0xff]  }
  0x19   :  { %v943_v19 = vld [vmem:[%s1268_s5 + $0x28] sm:$0xff]   ;;  %v688_v20 = vld [vmem:[%s1265_s2] ss:$0 sm:$0xff]  ;;  %v936_v29 = vld [vmem:[%s1264_s1 + $0x10] sm:$0xff]  }
  0x1a   :  { %824 = vmatpush3.bf16.msra.mxu0 %v927_v2  ;;  %832 = vmatpush3.bf16.msra.mxu1 %v929_v7  ;;  %v937_v31 = vld [vmem:[%s1264_s1 + $0x18] sm:$0xff]   ;;  %v944_v33 = vld [vmem:[%s1268_s5 + $0x30] sm:$0xff]   ;;  %v692_v35 = vld [vmem:[%s1267_s4] ss:$0 sm:$0xff] }
  0x1b   :  { %849 = vmatprep.subr.bf16.mxu0 %v1013_v0  ;;  %833 = vmatprep.subr.bf16.mxu1 %v1013_v0  ;;  %v945_v34 = vld [vmem:[%s1268_s5 + $0x38] sm:$0xff]   ;;  %v946_v44 = vld [vmem:[%s1266_s3 + $0x40] sm:$0xff]   ;;  %v947_v50 = vld [vmem:[%s1266_s3 + $0x48] sm:$0xff]  }
  0x1c   :  { %v717_v45 = vld [vmem:[%s1265_s2 + $0x1] ss:$0 sm:$0xff]  ;;  %v948_v56 = vld [vmem:[%s1266_s3 + $0x50] sm:$0xff]   ;;  %v949_v58 = vld [vmem:[%s1266_s3 + $0x58] sm:$0xff]  }
  0x1d   :  { %826 = vmatmul.mubr.msk.bf16.vlgmr.msra.gmra.mrb[0].mxu0 %vm68_vm1, %v44_v5  ;;  %v950_v59 = vld [vmem:[%s1266_s3 + $0x60] sm:$0xff]   ;;  %v951_v60 = vld [vmem:[%s1266_s3 + $0x68] sm:$0xff]   ;;  %v952_v61 = vld [vmem:[%s1266_s3 + $0x70] sm:$0xff]  }
  0x1e   :  { %865 = vmatprep.mubr.msk.bf16.mxu0 %vm1014_vm0, %v1013_v0  ;;  %834 = vmatpush3.bf16.msra.mxu1 %v930_v8  ;;  %v953_v62 = vld [vmem:[%s1266_s3 + $0x78] sm:$0xff]   ;;  %v954_v63 = vld [vmem:[%s1268_s5 + $0x40] sm:$0xff]   ;;  %v955_v1 = vld [vmem:[%s1268_s5 + $0x48] sm:$0xff]  }
  0x1f   :  { %835 = vmatprep.subr.bf16.mxu1 %v1013_v0  ;;  %850 = vmatpush3.bf16.msra.mxu0 %v938_v14  ;;  %v956_v2 = vld [vmem:[%s1268_s5 + $0x50] sm:$0xff]   ;;  %v957_v3 = vld [vmem:[%s1268_s5 + $0x58] sm:$0xff]   ;;  %v958_v4 = vld [vmem:[%s1268_s5 + $0x60] sm:$0xff]  }
  0x20   :  { %851 = vmatprep.subr.bf16.mxu0 %v1013_v0  ;;  %v959_v5 = vld [vmem:[%s1268_s5 + $0x68] sm:$0xff]   ;;  %v960_v6 = vld [vmem:[%s1268_s5 + $0x70] sm:$0xff]   ;;  %v961_v7 = vld [vmem:[%s1268_s5 + $0x78] sm:$0xff]  }
  0x21   :  { %v701_v8 = vld [vmem:[%s1269_s6] ss:$0 sm:$0xff] }
  0x22   :  { %836 = vmatpush3.bf16.msra.mxu1 %v931_v9 }
  0x23   :  { %837 = vmatprep.subr.bf16.mxu1 %v1013_v0  ;;  %852 = vmatpush3.bf16.msra.mxu0 %v939_v15 }
  0x24   :  { %853 = vmatprep.subr.bf16.mxu0 %v1013_v0 }
  0x26   :  { %838 = vmatpush3.bf16.msra.mxu1 %v932_v10 }
  0x27   :  { %839 = vmatprep.subr.bf16.mxu1 %v1013_v0  ;;  %854 = vmatpush3.bf16.msra.mxu0 %v940_v16  ;;  %v738_v16 = vld [vmem:[%s1267_s4 + $0x1] ss:$0 sm:$0xff]  ;;  %s984_s4 = scalar_lea.vmem %s677_s22, 256 }
  0x28   :  { %855 = vmatprep.subr.bf16.mxu0 %v1013_v0  ;;  %p985_p8 = scmp.ne.s32.totalorder %s677_s22, %s984_s4  ;;  %p990_p10 = scmp.lt.s32.totalorder %s984_s4, %s984_s4 }
  0x2a   :  { %840 = vmatpush3.bf16.msra.mxu1 %v933_v11  ;;  %p991_p11 = por %p990_p10, %p989_p9 }
  0x2b   :  { %841 = vmatprep.subr.bf16.mxu1 %v1013_v0  ;;  %856 = vmatpush3.bf16.msra.mxu0 %v941_v17 }
  0x2c   :  { %857 = vmatprep.subr.bf16.mxu0 %v1013_v0  ;;  %p992_p12 = pnand %p991_p11, %p985_p8 }
  0x2e   :  { %842 = vmatpush3.bf16.msra.mxu1 %v934_v12 }
  0x2f   :  { %843 = vmatprep.subr.bf16.mxu1 %v1013_v0  ;;  %858 = vmatpush3.bf16.msra.mxu0 %v942_v18 }
  0x30   :  { %859 = vmatprep.subr.bf16.mxu0 %v1013_v0 }
  0x32   :  { %844 = vmatpush3.bf16.msra.mxu1 %v935_v13 }
  0x33   :  { %869 = vmatprep.subr.bf16.mxu1 %v1013_v0  ;;  %860 = vmatpush3.bf16.msra.mxu0 %v943_v19 }
  0x34   :  { %861 = vmatprep.subr.bf16.mxu0 %v1013_v0 }
  0x37   :  { %862 = vmatpush3.bf16.msra.mxu0 %v944_v33 }
  0x38   :  { %863 = vmatprep.subr.bf16.mxu0 %v1013_v0 }
  0x3b   :  { %864 = vmatpush3.bf16.msra.mxu0 %v945_v34 }
  0x3c   :  { %877 = vmatprep.subr.bf16.mxu0 %v1013_v0 }
  0x89   :  { %v369_v32 = vpop.permute.xlu0 %368 }
  0xf0   :  { %v106_v21 = vpop.f32.mrb[0].mxu0 }
  0xf1   :  { %v107_v22 = vadd.f32 %v688_v20, %v106_v21  ;;  %v827_v23 = vpop.f32.mrb[1].mxu0 }
  0xf2   :  { %v109_v24 = vpop.f32.mrb[2].mxu0 }
  0xf3   :  { %v110_v25 = vadd.f32 %v688_v20, %v109_v24  ;;  %v828_v26 = vpop.f32.mrb[3].mxu0  ;;  %v113_v27 = vmax.f32 %v107_v22, 0.0 }
  0xf4   :  { %v764_v26 = vld [vmem:[%s1269_s6 + $0x1] ss:$0 sm:$0xff] }
  0xf5   :  { %v114_v28 = vmax.f32 %v110_v25, 0.0 }
  0xf7   :  { %v115_v30 = vpack.c.bf16 %v114_v28, %v113_v27 }
  0xf9   :  { %846 = vmatmul.mubr.bf16.vlgmr.msra.gmra.mrb[0].mxu1 %v115_v30 }
  0xfa   :  { %870 = vmatpush3.bf16.msra.mxu1 %v936_v29  ;;  %873 = vmatprep.mubr.msk.bf16.mxu1 %vm1014_vm0, %v1013_v0 }
  0xfb   :  { %871 = vmatprep.subr.bf16.mxu1 %v1013_v0 }
  0xfe   :  { %872 = vmatpush3.bf16.msra.mxu1 %v937_v31 }
  0xff   :  { %897 = vmatprep.subr.bf16.mxu1 %v1013_v0 }
 0x101   :  { %874 = vmatmul.mubr.msk.bf16.vlgmr.msra.gmra.mrb[4].mxu1 %vm68_vm1, %v369_v32 }
 0x102   :  { %913 = vmatprep.mubr.msk.bf16.mxu1 %vm1014_vm0, %v1013_v0  ;;  %898 = vmatpush3.bf16.msra.mxu1 %v954_v63 }
 0x103   :  { %899 = vmatprep.subr.bf16.mxu1 %v1013_v0 }
 0x106   :  { %900 = vmatpush3.bf16.msra.mxu1 %v955_v1 }
 0x107   :  { %901 = vmatprep.subr.bf16.mxu1 %v1013_v0 }
 0x10a   :  { %902 = vmatpush3.bf16.msra.mxu1 %v956_v2 }
 0x10b   :  { %903 = vmatprep.subr.bf16.mxu1 %v1013_v0 }
 0x10e   :  { %904 = vmatpush3.bf16.msra.mxu1 %v957_v3 }
 0x10f   :  { %905 = vmatprep.subr.bf16.mxu1 %v1013_v0 }
 0x112   :  { %906 = vmatpush3.bf16.msra.mxu1 %v958_v4 }
 0x113   :  { %907 = vmatprep.subr.bf16.mxu1 %v1013_v0 }
 0x116   :  { %908 = vmatpush3.bf16.msra.mxu1 %v959_v5 }
 0x117   :  { %909 = vmatprep.subr.bf16.mxu1 %v1013_v0 }
 0x11a   :  { %910 = vmatpush3.bf16.msra.mxu1 %v960_v6 }
 0x11b   :  { %911 = vmatprep.subr.bf16.mxu1 %v1013_v0 }
 0x11e   :  { %912 = vmatpush3.bf16.msra.mxu1 %v961_v7 }
 0x1cc   :  { %v221_v36 = vpop.f32.mrb[0].mxu1 }
 0x1cd   :  { %v222_v37 = vadd.f32 %v692_v35, %v221_v36  ;;  %v847_v38 = vpop.f32.mrb[1].mxu1 }
 0x1ce   :  { %v224_v39 = vpop.f32.mrb[2].mxu1 }
 0x1cf   :  { %v225_v40 = vadd.f32 %v692_v35, %v224_v39  ;;  %v848_v41 = vpop.f32.mrb[3].mxu1  ;;  %v228_v42 = vmax.f32 %v222_v37, 0.0 }
 0x1d1   :  { %v229_v43 = vmax.f32 %v225_v40, 0.0 }
 0x1d3   :  { %v230_v46 = vpack.c.bf16 %v229_v43, %v228_v42 }
 0x1d4   :  { %v419_v47 = vpop.f32.mrb[4].mxu1 }
 0x1d5   :  { %866 = vmatmul.mubr.bf16.vlgmr.msra.gmra.mrb[4].mxu0 %v230_v46  ;;  %v420_v48 = vadd.f32 %v717_v45, %v419_v47  ;;  %v875_v49 = vpop.f32.mrb[5].mxu1 }
 0x1d6   :  { %878 = vmatpush3.bf16.msra.mxu0 %v946_v44  ;;  %v422_v51 = vpop.f32.mrb[6].mxu1  ;;  %893 = vmatprep.mubr.msk.bf16.mxu0 %vm1014_vm0, %v1013_v0 }
 0x1d7   :  { %879 = vmatprep.subr.bf16.mxu0 %v1013_v0  ;;  %v426_v52 = vmax.f32 %v420_v48, 0.0  ;;  %v423_v53 = vadd.f32 %v717_v45, %v422_v51  ;;  %v876_v54 = vpop.f32.mrb[7].mxu1 }
 0x1d9   :  { %v427_v55 = vmax.f32 %v423_v53, 0.0 }
 0x1da   :  { %880 = vmatpush3.bf16.msra.mxu0 %v947_v50 }
 0x1db   :  { %881 = vmatprep.subr.bf16.mxu0 %v1013_v0  ;;  %v428_v57 = vpack.c.bf16 %v427_v55, %v426_v52 }
 0x1de   :  { %882 = vmatpush3.bf16.msra.mxu0 %v948_v56 }
 0x1df   :  { %883 = vmatprep.subr.bf16.mxu0 %v1013_v0 }
 0x1e2   :  { %884 = vmatpush3.bf16.msra.mxu0 %v949_v58 }
 0x1e3   :  { %885 = vmatprep.subr.bf16.mxu0 %v1013_v0 }
 0x1e6   :  { %886 = vmatpush3.bf16.msra.mxu0 %v950_v59 }
 0x1e7   :  { %887 = vmatprep.subr.bf16.mxu0 %v1013_v0 }
 0x1ea   :  { %888 = vmatpush3.bf16.msra.mxu0 %v951_v60 }
 0x1eb   :  { %889 = vmatprep.subr.bf16.mxu0 %v1013_v0 }
 0x1ee   :  { %890 = vmatpush3.bf16.msra.mxu0 %v952_v61 }
 0x1ef   :  { %891 = vmatprep.subr.bf16.mxu0 %v1013_v0 }
 0x1f2   :  { %892 = vmatpush3.bf16.msra.mxu0 %v953_v62 }
 0x1f5   :  { %894 = vmatmul.mubr.bf16.vlgmr.msra.gmra.mrb[8].mxu0 %v428_v57 }
 0x2a8   :  { %v336_v9 = vpop.f32.mrb[4].mxu0 }
 0x2a9   :  { %v337_v10 = vadd.f32 %v701_v8, %v336_v9  ;;  %v867_v11 = vpop.f32.mrb[5].mxu0 }
 0x2aa   :  { %v339_v12 = vpop.f32.mrb[6].mxu0 }
 0x2ab   :  { %v775_v13 = vpack.c.bf16 %v337_v10, %v337_v10  ;;  %v340_v14 = vadd.f32 %v701_v8, %v339_v12  ;;  %v868_v15 = vpop.f32.mrb[7].mxu0 }
 0x2ad   :  { %352 = vst.msk [vmem:[#allocation5] sm:$0xf] %vm351_vm2, %v775_v13  ;;  %v776_v0 = vpack.c.bf16 %v340_v14, %v340_v14 }
 0x2af   :  { %353 = vst.msk [vmem:[#allocation5 + $0x4] sm:$0xf] %vm351_vm2, %v776_v0 }
 0x2c8   :  { %v536_v17 = vpop.f32.mrb[8].mxu0 }
 0x2c9   :  { %v537_v18 = vadd.f32 %v738_v16, %v536_v17  ;;  %v895_v19 = vpop.f32.mrb[9].mxu0 }
 0x2ca   :  { %v539_v20 = vpop.f32.mrb[10].mxu0 }
 0x2cb   :  { %v540_v21 = vadd.f32 %v738_v16, %v539_v20  ;;  %v896_v22 = vpop.f32.mrb[11].mxu0  ;;  %v543_v23 = vmax.f32 %v537_v18, 0.0 }
 0x2cd   :  { %v544_v24 = vmax.f32 %v540_v21, 0.0 }
 0x2cf   :  { %v545_v25 = vpack.c.bf16 %v544_v24, %v543_v23 }
 0x2d1   :  { %914 = vmatmul.mubr.bf16.vlgmr.msra.gmra.mrb[8].mxu1 %v545_v25 }
 0x3a4   :  { %v653_v27 = vpop.f32.mrb[8].mxu1 }
 0x3a5   :  { %v654_v28 = vadd.f32 %v764_v26, %v653_v27  ;;  %v915_v29 = vpop.f32.mrb[9].mxu1 }
 0x3a6   :  { %v656_v30 = vpop.f32.mrb[10].mxu1 }
 0x3a7   :  { %v777_v31 = vpack.c.bf16 %v654_v28, %v654_v28  ;;  %v657_v32 = vadd.f32 %v764_v26, %v656_v30  ;;  %v916_v33 = vpop.f32.mrb[11].mxu1 }
 0x3a9   :  { %669 = vst.msk [vmem:[#allocation5 + $0x8] sm:$0xf] %vm351_vm2, %v777_v31  ;;  %v778_v34 = vpack.c.bf16 %v657_v32, %v657_v32 }
 0x3ab   :  { %670 = vst.msk [vmem:[#allocation5 + $0xc] sm:$0xf] %vm351_vm2, %v778_v34 }
 0x3ac   :  { %995 = shalt.err (!%p992_p12)
}
 0x3ad   :  { %s996_s24 = scalar_lea.hbm %s1270_s7, 256 }
 0x3ae   :  { %p997_p13 = scmp.ne.s32.totalorder %s1270_s7, %s996_s24  ;;  %p1000_p0 = scmp.lt.u32.totalorder %s996_s24, %s1270_s7 }
 0x3b0   :  { %p1002_p1 = pnand %p1000_p0, %p997_p13 }
 0x3b2   :  { %1005 = shalt.err (!%p1002_p1)
}
 0x3b3   :  { %s1017_s29 = smov 64   ;;  %s1018_s30 = smov 4  }
 0x3b4   :  { %682 = dma.vmem_to_hbm [thread:$0]  %s677_s22, 256, %s1270_s7, [#allocation4], %s1017_s29, %s1017_s29, %s1018_s30  }
 0x3b5   :  { %1008 = dma.done.wait [#allocation4], 256  }
 0x3b6   :  { %1009 = vsyncadd [#allocation4], 4294967040 }
 0x3b7   :  { %686 = vsyncpa [#allocation3], 1 }
 0x3b8   :  { %687 = vsyncpa [#allocation4], 1 }

// kernel: tpu_custom_call.1
= control target key start
LH: loop header
LB: loop body
LE: loop exit
PB: predicated region body
PF: predicated region fallthrough
CT: control target
= control target key end

     0   :  { %12 = vsyncpa [#allocation3], 0  ;;  %s1263_s0 = inlined_call_operand.hbm [shape: f32[16,64], index: 0, kind: input, shape index: {}]   ;;  %s1264_s1 = inlined_call_operand.vmem [shape: bf16[2,32,128], index: 1, kind: input, shape index: {}]   ;;  %s1265_s2 = inlined_call_operand.vmem [shape: f32[2,1,128], index: 2, kind: input, shape index: {}]   ;;  %s1266_s3 = inlined_call_operand.vmem [shape: bf16[2,128,128], index: 3, kind: input, shape index: {}]   ;;  %s1267_s4 = inlined_call_operand.vmem [shape: f32[2,1,128], index: 4, kind: input, shape index: {}]   ;;  %s1268_s5 = inlined_call_operand.vmem [shape: bf16[2,128,24], index: 5, kind: input, shape index: {}]   ;;  %s1269_s6 = inlined_call_operand.vmem [shape: f32[2,1,24], index: 6, kind: input, shape index: {}]   ;;  %s1270_s7 = inlined_call_operand.hbm [shape: bf16[2,16,24], index: 7, kind: output, shape index: {}]  }
   0x1   :  { %13 = vsyncpa [#allocation4], 0  ;;  %s1010_s24 = smov [#allocation2]   ;;  %s962_s28 = scalar_lea.hbm %s1263_s0, 256 }
   0x2   :  { %s19_s25 = sshll.u32 %s1010_s24, 4  ;;  %p963_p0 = scmp.ne.s32.totalorder %s1263_s0, %s962_s28  ;;  %s20_s25 = int_to_ptr.vmem [resolvable:$true] %s19_s25 }
   0x3   :  { %p966_p1 = scmp.lt.u32.totalorder %s962_s28, %s1263_s0 }
   0x5   :  { %p968_p2 = pnand %p966_p1, %p963_p0 }
   0x7   :  { %971 = shalt.err (!%p968_p2)
}
   0x8   :  { %s972_s10 = scalar_lea.vmem %s20_s25, 256  ;;  %p977_p4 = scmp.lt.s32.totalorder %s20_s25, %s20_s25 }
   0x9   :  { %p973_p3 = scmp.ne.s32.totalorder %s20_s25, %s972_s10  ;;  %p978_p5 = scmp.lt.s32.totalorder %s972_s10, %s972_s10 }
   0xb   :  { %p979_p6 = por %p978_p5, %p977_p4 }
   0xd   :  { %p980_p7 = pnand %p979_p6, %p973_p3 }
   0xf   :  { %983 = shalt.err (!%p980_p7)
}
  0x10   :  { %s1011_s11 = smov 128   ;;  %s1012_s12 = smov 8  }
  0x11   :  { %25 = dma.hbm_to_vmem [thread:$0]  %s1263_s0, 256, %s20_s25, [#allocation3], %s1011_s11, %s1011_s11, %s1012_s12  }
  0x12   :  { %1006 = dma.done.wait [#allocation3], 256  }
  0x13   :  { %1007 = vsyncadd [#allocation3], 4294967040  ;;  %v1013_v0 = vmov 0.0   ;;  %vm1014_vm0 = vmmov 0   ;;  %v926_v1 = vld [vmem:[%s1264_s1] sm:$0xff]   ;;  %v927_v2 = vld [vmem:[%s1264_s1 + $0x8] sm:$0xff]  }
  0x14   :  { %821 = vmatprep.subr.bf16.mxu0 %v1013_v0  ;;  %825 = vmatprep.mubr.msk.bf16.mxu0 %vm1014_vm0, %v1013_v0  ;;  %v42_v3 = vld [vmem:[#allocation2] sm:$0xff]  ;;  %v43_v4 = vld [vmem:[#allocation2 + $0x8] sm:$0xff]  ;;  %s1015_s20 = smov 96   ;;  %vm68_vm1 = vcmask 261120   ;;  %v930_v8 = vld [vmem:[%s1266_s3 + $0x10] sm:$0xff]   ;;  %vm351_vm2 = vcmask 191488  }
  0x15   :  { %829 = vmatprep.subr.bf16.mxu1 %v1013_v0  ;;  %845 = vmatprep.mubr.msk.bf16.mxu1 %vm1014_vm0, %v1013_v0  ;;  %v44_v5 = vpack.c.bf16 %v43_v4, %v42_v3  ;;  %v928_v6 = vld [vmem:[%s1266_s3] sm:$0xff]   ;;  %v929_v7 = vld [vmem:[%s1266_s3 + $0x8] sm:$0xff]   ;;  %v931_v9 = vld [vmem:[%s1266_s3 + $0x18] sm:$0xff]   ;;  %s1016_s21 = smov [#allocation5]  }
  0x16   :  { %822 = vmatpush3.bf16.msra.mxu0 %v926_v1  ;;  %830 = vmatpush3.bf16.msra.mxu1 %v928_v6  ;;  %v932_v10 = vld [vmem:[%s1266_s3 + $0x20] sm:$0xff]   ;;  %v933_v11 = vld [vmem:[%s1266_s3 + $0x28] sm:$0xff]   ;;  %v934_v12 = vld [vmem:[%s1266_s3 + $0x30] sm:$0xff]   ;;  %s676_s22 = sshll.u32 %s1016_s21, 4  ;;  %s677_s22 = int_to_ptr.vmem [resolvable:$true] %s676_s22 }
  0x17   :  { %823 = vmatprep.subr.bf16.mxu0 %v1013_v0  ;;  %368 = vrot.lane.b32.xlu0 %v44_v5, %s1015_s20  ;;  %v935_v13 = vld [vmem:[%s1266_s3 + $0x38] sm:$0xff]   ;;  %v938_v14 = vld [vmem:[%s1268_s5] sm:$0xff]   ;;  %v939_v15 = vld [vmem:[%s1268_s5 + $0x8] sm:$0xff]   ;;  %p989_p9 = scmp.lt.s32.totalorder %s677_s22, %s677_s22 }
  0x18   :  { %831 = vmatprep.subr.bf16.mxu1 %v1013_v0  ;;  %v940_v16 = vld [vmem:[%s1268_s5 + $0x10] sm:$0xff]   ;;  %v941_v17 = vld [vmem:[%s1268_s5 + $0x18] sm:$0xff]   ;;  %v942_v18 = vld [vmem:[%s1268_s5 + $0x20] sm:$0xff]  }
  0x19   :  { %v943_v19 = vld [vmem:[%s1268_s5 + $0x28] sm:$0xff]   ;;  %v688_v20 = vld [vmem:[%s1265_s2] ss:$0 sm:$0xff]  ;;  %v936_v29 = vld [vmem:[%s1264_s1 + $0x10] sm:$0xff]  }
  0x1a   :  { %824 = vmatpush3.bf16.msra.mxu0 %v927_v2  ;;  %832 = vmatpush3.bf16.msra.mxu1 %v929_v7  ;;  %v937_v31 = vld [vmem:[%s1264_s1 + $0x18] sm:$0xff]   ;;  %v944_v33 = vld [vmem:[%s1268_s5 + $0x30] sm:$0xff]   ;;  %v692_v35 = vld [vmem:[%s1267_s4] ss:$0 sm:$0xff] }
  0x1b   :  { %849 = vmatprep.subr.bf16.mxu0 %v1013_v0  ;;  %833 = vmatprep.subr.bf16.mxu1 %v1013_v0  ;;  %v945_v34 = vld [vmem:[%s1268_s5 + $0x38] sm:$0xff]   ;;  %v946_v44 = vld [vmem:[%s1266_s3 + $0x40] sm:$0xff]   ;;  %v947_v50 = vld [vmem:[%s1266_s3 + $0x48] sm:$0xff]  }
  0x1c   :  { %v717_v45 = vld [vmem:[%s1265_s2 + $0x1] ss:$0 sm:$0xff]  ;;  %v948_v56 = vld [vmem:[%s1266_s3 + $0x50] sm:$0xff]   ;;  %v949_v58 = vld [vmem:[%s1266_s3 + $0x58] sm:$0xff]  }
  0x1d   :  { %826 = vmatmul.mubr.msk.bf16.vlgmr.msra.gmra.mrb[0].mxu0 %vm68_vm1, %v44_v5  ;;  %v950_v59 = vld [vmem:[%s1266_s3 + $0x60] sm:$0xff]   ;;  %v951_v60 = vld [vmem:[%s1266_s3 + $0x68] sm:$0xff]   ;;  %v952_v61 = vld [vmem:[%s1266_s3 + $0x70] sm:$0xff]  }
  0x1e   :  { %865 = vmatprep.mubr.msk.bf16.mxu0 %vm1014_vm0, %v1013_v0  ;;  %834 = vmatpush3.bf16.msra.mxu1 %v930_v8  ;;  %v953_v62 = vld [vmem:[%s1266_s3 + $0x78] sm:$0xff]   ;;  %v954_v63 = vld [vmem:[%s1268_s5 + $0x40] sm:$0xff]   ;;  %v955_v1 = vld [vmem:[%s1268_s5 + $0x48] sm:$0xff]  }
  0x1f   :  { %835 = vmatprep.subr.bf16.mxu1 %v1013_v0  ;;  %850 = vmatpush3.bf16.msra.mxu0 %v938_v14  ;;  %v956_v2 = vld [vmem:[%s1268_s5 + $0x50] sm:$0xff]   ;;  %v957_v3 = vld [vmem:[%s1268_s5 + $0x58] sm:$0xff]   ;;  %v958_v4 = vld [vmem:[%s1268_s5 + $0x60] sm:$0xff]  }
  0x20   :  { %851 = vmatprep.subr.bf16.mxu0 %v1013_v0  ;;  %v959_v5 = vld [vmem:[%s1268_s5 + $0x68] sm:$0xff]   ;;  %v960_v6 = vld [vmem:[%s1268_s5 + $0x70] sm:$0xff]   ;;  %v961_v7 = vld [vmem:[%s1268_s5 + $0x78] sm:$0xff]  }
  0x21   :  { %v701_v8 = vld [vmem:[%s1269_s6] ss:$0 sm:$0xff] }
  0x22   :  { %836 = vmatpush3.bf16.msra.mxu1 %v931_v9 }
  0x23   :  { %837 = vmatprep.subr.bf16.mxu1 %v1013_v0  ;;  %852 = vmatpush3.bf16.msra.mxu0 %v939_v15 }
  0x24   :  { %853 = vmatprep.subr.bf16.mxu0 %v1013_v0 }
  0x26   :  { %838 = vmatpush3.bf16.msra.mxu1 %v932_v10 }
  0x27   :  { %839 = vmatprep.subr.bf16.mxu1 %v1013_v0  ;;  %854 = vmatpush3.bf16.msra.mxu0 %v940_v16  ;;  %v738_v16 = vld [vmem:[%s1267_s4 + $0x1] ss:$0 sm:$0xff]  ;;  %s984_s4 = scalar_lea.vmem %s677_s22, 256 }
  0x28   :  { %855 = vmatprep.subr.bf16.mxu0 %v1013_v0  ;;  %p985_p8 = scmp.ne.s32.totalorder %s677_s22, %s984_s4  ;;  %p990_p10 = scmp.lt.s32.totalorder %s984_s4, %s984_s4 }
  0x2a   :  { %840 = vmatpush3.bf16.msra.mxu1 %v933_v11  ;;  %p991_p11 = por %p990_p10, %p989_p9 }
  0x2b   :  { %841 = vmatprep.subr.bf16.mxu1 %v1013_v0  ;;  %856 = vmatpush3.bf16.msra.mxu0 %v941_v17 }
  0x2c   :  { %857 = vmatprep.subr.bf16.mxu0 %v1013_v0  ;;  %p992_p12 = pnand %p991_p11, %p985_p8 }
  0x2e   :  { %842 = vmatpush3.bf16.msra.mxu1 %v934_v12 }
  0x2f   :  { %843 = vmatprep.subr.bf16.mxu1 %v1013_v0  ;;  %858 = vmatpush3.bf16.msra.mxu0 %v942_v18 }
  0x30   :  { %859 = vmatprep.subr.bf16.mxu0 %v1013_v0 }
  0x32   :  { %844 = vmatpush3.bf16.msra.mxu1 %v935_v13 }
  0x33   :  { %869 = vmatprep.subr.bf16.mxu1 %v1013_v0  ;;  %860 = vmatpush3.bf16.msra.mxu0 %v943_v19 }
  0x34   :  { %861 = vmatprep.subr.bf16.mxu0 %v1013_v0 }
  0x37   :  { %862 = vmatpush3.bf16.msra.mxu0 %v944_v33 }
  0x38   :  { %863 = vmatprep.subr.bf16.mxu0 %v1013_v0 }
  0x3b   :  { %864 = vmatpush3.bf16.msra.mxu0 %v945_v34 }
  0x3c   :  { %877 = vmatprep.subr.bf16.mxu0 %v1013_v0 }
  0x89   :  { %v369_v32 = vpop.permute.xlu0 %368 }
  0xf0   :  { %v106_v21 = vpop.f32.mrb[0].mxu0 }
  0xf1   :  { %v107_v22 = vadd.f32 %v688_v20, %v106_v21  ;;  %v827_v23 = vpop.f32.mrb[1].mxu0 }
  0xf2   :  { %v109_v24 = vpop.f32.mrb[2].mxu0 }
  0xf3   :  { %v110_v25 = vadd.f32 %v688_v20, %v109_v24  ;;  %v828_v26 = vpop.f32.mrb[3].mxu0  ;;  %v113_v27 = vmax.f32 %v107_v22, 0.0 }
  0xf4   :  { %v764_v26 = vld [vmem:[%s1269_s6 + $0x1] ss:$0 sm:$0xff] }
  0xf5   :  { %v114_v28 = vmax.f32 %v110_v25, 0.0 }
  0xf7   :  { %v115_v30 = vpack.c.bf16 %v114_v28, %v113_v27 }
  0xf9   :  { %846 = vmatmul.mubr.bf16.vlgmr.msra.gmra.mrb[0].mxu1 %v115_v30 }
  0xfa   :  { %870 = vmatpush3.bf16.msra.mxu1 %v936_v29  ;;  %873 = vmatprep.mubr.msk.bf16.mxu1 %vm1014_vm0, %v1013_v0 }
  0xfb   :  { %871 = vmatprep.subr.bf16.mxu1 %v1013_v0 }
  0xfe   :  { %872 = vmatpush3.bf16.msra.mxu1 %v937_v31 }
  0xff   :  { %897 = vmatprep.subr.bf16.mxu1 %v1013_v0 }
 0x101   :  { %874 = vmatmul.mubr.msk.bf16.vlgmr.msra.gmra.mrb[4].mxu1 %vm68_vm1, %v369_v32 }
 0x102   :  { %913 = vmatprep.mubr.msk.bf16.mxu1 %vm1014_vm0, %v1013_v0  ;;  %898 = vmatpush3.bf16.msra.mxu1 %v954_v63 }
 0x103   :  { %899 = vmatprep.subr.bf16.mxu1 %v1013_v0 }
 0x106   :  { %900 = vmatpush3.bf16.msra.mxu1 %v955_v1 }
 0x107   :  { %901 = vmatprep.subr.bf16.mxu1 %v1013_v0 }
 0x10a   :  { %902 = vmatpush3.bf16.msra.mxu1 %v956_v2 }
 0x10b   :  { %903 = vmatprep.subr.bf16.mxu1 %v1013_v0 }
 0x10e   :  { %904 = vmatpush3.bf16.msra.mxu1 %v957_v3 }
 0x10f   :  { %905 = vmatprep.subr.bf16.mxu1 %v1013_v0 }
 0x112   :  { %906 = vmatpush3.bf16.msra.mxu1 %v958_v4 }
 0x113   :  { %907 = vmatprep.subr.bf16.mxu1 %v1013_v0 }
 0x116   :  { %908 = vmatpush3.bf16.msra.mxu1 %v959_v5 }
 0x117   :  { %909 = vmatprep.subr.bf16.mxu1 %v1013_v0 }
 0x11a   :  { %910 = vmatpush3.bf16.msra.mxu1 %v960_v6 }
 0x11b   :  { %911 = vmatprep.subr.bf16.mxu1 %v1013_v0 }
 0x11e   :  { %912 = vmatpush3.bf16.msra.mxu1 %v961_v7 }
 0x1cc   :  { %v221_v36 = vpop.f32.mrb[0].mxu1 }
 0x1cd   :  { %v222_v37 = vadd.f32 %v692_v35, %v221_v36  ;;  %v847_v38 = vpop.f32.mrb[1].mxu1 }
 0x1ce   :  { %v224_v39 = vpop.f32.mrb[2].mxu1 }
 0x1cf   :  { %v225_v40 = vadd.f32 %v692_v35, %v224_v39  ;;  %v848_v41 = vpop.f32.mrb[3].mxu1  ;;  %v228_v42 = vmax.f32 %v222_v37, 0.0 }
 0x1d1   :  { %v229_v43 = vmax.f32 %v225_v40, 0.0 }
 0x1d3   :  { %v230_v46 = vpack.c.bf16 %v229_v43, %v228_v42 }
 0x1d4   :  { %v419_v47 = vpop.f32.mrb[4].mxu1 }
 0x1d5   :  { %866 = vmatmul.mubr.bf16.vlgmr.msra.gmra.mrb[4].mxu0 %v230_v46  ;;  %v420_v48 = vadd.f32 %v717_v45, %v419_v47  ;;  %v875_v49 = vpop.f32.mrb[5].mxu1 }
 0x1d6   :  { %878 = vmatpush3.bf16.msra.mxu0 %v946_v44  ;;  %v422_v51 = vpop.f32.mrb[6].mxu1  ;;  %893 = vmatprep.mubr.msk.bf16.mxu0 %vm1014_vm0, %v1013_v0 }
 0x1d7   :  { %879 = vmatprep.subr.bf16.mxu0 %v1013_v0  ;;  %v426_v52 = vmax.f32 %v420_v48, 0.0  ;;  %v423_v53 = vadd.f32 %v717_v45, %v422_v51  ;;  %v876_v54 = vpop.f32.mrb[7].mxu1 }
 0x1d9   :  { %v427_v55 = vmax.f32 %v423_v53, 0.0 }
 0x1da   :  { %880 = vmatpush3.bf16.msra.mxu0 %v947_v50 }
 0x1db   :  { %881 = vmatprep.subr.bf16.mxu0 %v1013_v0  ;;  %v428_v57 = vpack.c.bf16 %v427_v55, %v426_v52 }
 0x1de   :  { %882 = vmatpush3.bf16.msra.mxu0 %v948_v56 }
 0x1df   :  { %883 = vmatprep.subr.bf16.mxu0 %v1013_v0 }
 0x1e2   :  { %884 = vmatpush3.bf16.msra.mxu0 %v949_v58 }
 0x1e3   :  { %885 = vmatprep.subr.bf16.mxu0 %v1013_v0 }
 0x1e6   :  { %886 = vmatpush3.bf16.msra.mxu0 %v950_v59 }
 0x1e7   :  { %887 = vmatprep.subr.bf16.mxu0 %v1013_v0 }
 0x1ea   :  { %888 = vmatpush3.bf16.msra.mxu0 %v951_v60 }
 0x1eb   :  { %889 = vmatprep.subr.bf16.mxu0 %v1013_v0 }
 0x1ee   :  { %890 = vmatpush3.bf16.msra.mxu0 %v952_v61 }
 0x1ef   :  { %891 = vmatprep.subr.bf16.mxu0 %v1013_v0 }
 0x1f2   :  { %892 = vmatpush3.bf16.msra.mxu0 %v953_v62 }
 0x1f5   :  { %894 = vmatmul.mubr.bf16.vlgmr.msra.gmra.mrb[8].mxu0 %v428_v57 }
 0x2a8   :  { %v336_v9 = vpop.f32.mrb[4].mxu0 }
 0x2a9   :  { %v337_v10 = vadd.f32 %v701_v8, %v336_v9  ;;  %v867_v11 = vpop.f32.mrb[5].mxu0 }
 0x2aa   :  { %v339_v12 = vpop.f32.mrb[6].mxu0 }
 0x2ab   :  { %v775_v13 = vpack.c.bf16 %v337_v10, %v337_v10  ;;  %v340_v14 = vadd.f32 %v701_v8, %v339_v12  ;;  %v868_v15 = vpop.f32.mrb[7].mxu0 }
 0x2ad   :  { %352 = vst.msk [vmem:[#allocation5] sm:$0xf] %vm351_vm2, %v775_v13  ;;  %v776_v0 = vpack.c.bf16 %v340_v14, %v340_v14 }
 0x2af   :  { %353 = vst.msk [vmem:[#allocation5 + $0x4] sm:$0xf] %vm351_vm2, %v776_v0 }
 0x2c8   :  { %v536_v17 = vpop.f32.mrb[8].mxu0 }
 0x2c9   :  { %v537_v18 = vadd.f32 %v738_v16, %v536_v17  ;;  %v895_v19 = vpop.f32.mrb[9].mxu0 }
 0x2ca   :  { %v539_v20 = vpop.f32.mrb[10].mxu0 }
 0x2cb   :  { %v540_v21 = vadd.f32 %v738_v16, %v539_v20  ;;  %v896_v22 = vpop.f32.mrb[11].mxu0  ;;  %v543_v23 = vmax.f32 %v537_v18, 0.0 }
 0x2cd   :  { %v544_v24 = vmax.f32 %v540_v21, 0.0 }
 0x2cf   :  { %v545_v25 = vpack.c.bf16 %v544_v24, %v543_v23 }
 0x2d1   :  { %914 = vmatmul.mubr.bf16.vlgmr.msra.gmra.mrb[8].mxu1 %v545_v25 }
 0x3a4   :  { %v653_v27 = vpop.f32.mrb[8].mxu1 }
 0x3a5   :  { %v654_v28 = vadd.f32 %v764_v26, %v653_v27  ;;  %v915_v29 = vpop.f32.mrb[9].mxu1 }
 0x3a6   :  { %v656_v30 = vpop.f32.mrb[10].mxu1 }
 0x3a7   :  { %v777_v31 = vpack.c.bf16 %v654_v28, %v654_v28  ;;  %v657_v32 = vadd.f32 %v764_v26, %v656_v30  ;;  %v916_v33 = vpop.f32.mrb[11].mxu1 }
 0x3a9   :  { %669 = vst.msk [vmem:[#allocation5 + $0x8] sm:$0xf] %vm351_vm2, %v777_v31  ;;  %v778_v34 = vpack.c.bf16 %v657_v32, %v657_v32 }
 0x3ab   :  { %670 = vst.msk [vmem:[#allocation5 + $0xc] sm:$0xf] %vm351_vm2, %v778_v34 }
 0x3ac   :  { %995 = shalt.err (!%p992_p12)
}
 0x3ad   :  { %s996_s24 = scalar_lea.hbm %s1270_s7, 256 }
 0x3ae   :  { %p997_p13 = scmp.ne.s32.totalorder %s1270_s7, %s996_s24  ;;  %p1000_p0 = scmp.lt.u32.totalorder %s996_s24, %s1270_s7 }
 0x3b0   :  { %p1002_p1 = pnand %p1000_p0, %p997_p13 }
 0x3b2   :  { %1005 = shalt.err (!%p1002_p1)
}
 0x3b3   :  { %s1017_s29 = smov 64   ;;  %s1018_s30 = smov 4  }
 0x3b4   :  { %682 = dma.vmem_to_hbm [thread:$0]  %s677_s22, 256, %s1270_s7, [#allocation4], %s1017_s29, %s1017_s29, %s1018_s30  }
 0x3b5   :  { %1008 = dma.done.wait [#allocation4], 256  }
 0x3b6   :  { %1009 = vsyncadd [#allocation4], 4294967040 }
 0x3b7   :  { %686 = vsyncpa [#allocation3], 1 }
 0x3b8   :  { %687 = vsyncpa [#allocation4], 1 }

</bundles_post_ra>
